<compile_context>
chip_gen: v6e
topology: v6e:2x2x1
jax: 0.10.0
libtpu: 0.0.40
codegen_flags: <defaults>
</compile_context>

<pallas_src>
import functools

import jax
import jax.numpy as jnp
from jax.experimental import pallas as pl
from jax.experimental.pallas import tpu as pltpu


def _round_up(x, m):
    return ((x + m - 1) // m) * m


def _prop_kernel(scal_ref, dcol_ref, drow_ref, a_ref, xcol_ref, xrow_ref,
                 xprev_ref, out_ref, acc_ref, *, mxu_dtype):
    """One Chebyshev propagation step (row tile i, column-reduction j).

    out = alpha * d_row ⊙ (A @ (d_col ⊙ x_cur)) + beta * x_cur + gamma * x_prev
      X_1 = L_hat @ X_0        : alpha = -2/lam,  beta = 2/lam - 1,     gamma = 0
      X_k = 2 L_hat X_{k-1}-Xp : alpha = -4/lam,  beta = 2(2/lam - 1),  gamma = -1
    """
    j = pl.program_id(1)

    @pl.when(j == 0)
    def _init():
        acc_ref[...] = jnp.zeros_like(acc_ref)

    # d-scaling in f32 on the (tn, D_in) feature side; only A is an (N,N) MXU operand.
    xs = (dcol_ref[...] * xcol_ref[...]).astype(mxu_dtype)
    acc_ref[...] += jnp.dot(a_ref[...].astype(mxu_dtype), xs,
                            preferred_element_type=jnp.float32)

    @pl.when(j == pl.num_programs(1) - 1)
    def _finalize():
        alpha = scal_ref[0, 0]
        beta = scal_ref[0, 1]
        gamma = scal_ref[0, 2]
        out_ref[...] = (alpha * (drow_ref[...] * acc_ref[...])
                        + beta * xrow_ref[...]
                        + gamma * xprev_ref[...]).astype(out_ref.dtype)


def _proj_kernel(x_ref, w_ref, b_ref, out_ref, *, mxu_dtype):
    """Fused projection: out = X_stacked @ W_flat + bias (lane-dense output)."""
    out_ref[...] = (jnp.dot(x_ref[...].astype(mxu_dtype),
                            w_ref[...].astype(mxu_dtype),
                            preferred_element_type=jnp.float32)
                    + b_ref[...]).astype(out_ref.dtype)


def _propagate(scal, d_pad, adj_pad, x_cur, x_prev, *, t, mxu_dtype, vmem_limit):
    n_pad, d_in = x_cur.shape
    nt = n_pad // t
    kernel = functools.partial(_prop_kernel, mxu_dtype=mxu_dtype)
    return pl.pallas_call(
        kernel,
        out_shape=jax.ShapeDtypeStruct((n_pad, d_in), jnp.float32),
        grid=(nt, nt),
        in_specs=[
            pl.BlockSpec((1, 3), lambda i, j: (0, 0)),       # [alpha, beta, gamma]
            pl.BlockSpec((t, 1), lambda i, j: (j, 0)),       # d, column block
            pl.BlockSpec((t, 1), lambda i, j: (i, 0)),       # d, row block
            pl.BlockSpec((t, t), lambda i, j: (i, j)),       # adjacency tile
            pl.BlockSpec((t, d_in), lambda i, j: (j, 0)),    # x_cur, column block
            pl.BlockSpec((t, d_in), lambda i, j: (i, 0)),    # x_cur, row block
            pl.BlockSpec((t, d_in), lambda i, j: (i, 0)),    # x_prev, row block
        ],
        out_specs=pl.BlockSpec((t, d_in), lambda i, j: (i, 0)),
        scratch_shapes=[pltpu.VMEM((t, d_in), jnp.float32)],
        compiler_params=pltpu.CompilerParams(
            dimension_semantics=("parallel", "arbitrary"),
            vmem_limit_bytes=vmem_limit,
        ),
    )(scal, d_pad, d_pad, adj_pad, x_cur, x_cur, x_prev)


def _project(x_stack, w_flat, b_pad, *, t, mxu_dtype, vmem_limit):
    n_pad, kd = x_stack.shape
    d_out_pad = w_flat.shape[1]
    kernel = functools.partial(_proj_kernel, mxu_dtype=mxu_dtype)
    return pl.pallas_call(
        kernel,
        out_shape=jax.ShapeDtypeStruct((n_pad, d_out_pad), jnp.float32),
        grid=(n_pad // t,),
        in_specs=[
            pl.BlockSpec((t, kd), lambda i: (i, 0)),
            pl.BlockSpec((kd, d_out_pad), lambda i: (0, 0)),
            pl.BlockSpec((1, d_out_pad), lambda i: (0, 0)),
        ],
        out_specs=pl.BlockSpec((t, d_out_pad), lambda i: (i, 0)),
        compiler_params=pltpu.CompilerParams(
            dimension_semantics=("parallel",),
            vmem_limit_bytes=vmem_limit,
        ),
    )(x_stack, w_flat, b_pad)


def dense_cheb_conv(adj, feat, W, bias=None, lambda_max=None, *, block=512,
                    mxu_dtype=jnp.float32):
    """Pallas equivalent of DGL DenseChebConv.forward.

    adj: (N, N), feat: (N, D_in), W: (K, D_in, D_out), bias: (D_out,) or None.
    `block` is the square adjacency tile edge (multiple of 128; use 256 on v5e).
    `mxu_dtype=jnp.bfloat16` enables bf16 MXU operands with f32 accumulation.
    """
    N = adj.shape[0]
    k, d_in, d_out = W.shape

    adj_f32 = adj.astype(jnp.float32)
    feat_f32 = feat.astype(jnp.float32)

    # Degree normalization, computed once and reused by every kernel call.
    deg = jnp.maximum(jnp.sum(adj_f32, axis=1), 1.0)
    d = jax.lax.rsqrt(deg)                                     # (N,)

    if lambda_max is None:
        # TODO(synk): th.eig (general non-symmetric eigensolver) has no
        # TPU/Pallas equivalent; use the symmetric eigensolver instead (exact
        # whenever adj is symmetric).
        L = jnp.eye(N, dtype=jnp.float32) - d[:, None] * adj_f32 * d[None, :]
        lambda_max = jnp.max(jnp.linalg.eigvalsh(L))
    lam = jnp.asarray(lambda_max, jnp.float32)
    two_over_lam = 2.0 / lam

    # Tile sizes / padding: tiles are (8,128)-aligned; pad N to a tile multiple
    # so every block is full (no out-of-bounds reads), and pad D_out to 128 for
    # lane-dense output stores.
    block = max(128, _round_up(block, 128))
    t = min(block, _round_up(N, 128))
    n_pad = _round_up(N, t)
    d_out_pad = _round_up(d_out, 128)

    adj_p = jnp.pad(adj_f32, ((0, n_pad - N), (0, n_pad - N))).astype(mxu_dtype)
    feat_p = jnp.pad(feat_f32, ((0, n_pad - N), (0, 0)))
    d_p = jnp.pad(d, (0, n_pad - N), constant_values=1.0).reshape(n_pad, 1)

    # Rough VMEM budget (double-buffered tiles + scratch) with 2x headroom.
    est = 4 * (2 * t * t + 10 * t * d_in + 4 * t + 2 * t * k * d_in
               + k * d_in * d_out_pad + 2 * t * d_out_pad + 2 * d_out_pad + 8)
    vmem_limit = int(min(max(2 * est, 16 * 1024 * 1024), 48 * 1024 * 1024))

    # Chebyshev recurrence in feature space: X_0 = feat, X_1 = L_hat feat,
    # X_k = 2 L_hat X_{k-1} - X_{k-2}, with L_hat applied implicitly via A.
    xs = [feat_p]
    if k >= 2:
        scal1 = jnp.stack([-two_over_lam, two_over_lam - 1.0,
                           jnp.zeros((), jnp.float32)]).reshape(1, 3)
        x1 = _propagate(scal1, d_p, adj_p, feat_p, feat_p, t=t,
                        mxu_dtype=mxu_dtype, vmem_limit=vmem_limit)
        xs.append(x1)
        if k >= 3:
            scal2 = jnp.stack([-2.0 * two_over_lam, 2.0 * two_over_lam - 2.0,
                               jnp.full((), -1.0, jnp.float32)]).reshape(1, 3)
            x_prev, x_cur = feat_p, x1
            for _ in range(2, k):
                x_next = _propagate(scal2, d_p, adj_p, x_cur, x_prev, t=t,
                                    mxu_dtype=mxu_dtype, vmem_limit=vmem_limit)
                xs.append(x_next)
                x_prev, x_cur = x_cur, x_next

    # Fused, lane-dense projection: (n, K*D_in) @ (K*D_in, D_out_pad) + bias.
    x_stack = jnp.concatenate(xs, axis=1)
    w_flat = W.astype(jnp.float32).reshape(k * d_in, d_out)
    w_flat = jnp.pad(w_flat, ((0, 0), (0, d_out_pad - d_out)))
    b = jnp.zeros((d_out,), jnp.float32) if bias is None else bias.astype(jnp.float32)
    b_pad = jnp.pad(b.reshape(1, d_out), ((0, 0), (0, d_out_pad - d_out)))

    out_pad = _project(x_stack, w_flat, b_pad, t=t, mxu_dtype=mxu_dtype,
                       vmem_limit=vmem_limit)
    return out_pad[:N, :d_out].astype(feat.dtype)


def _reference(adj, feat, W, bias, lambda_max):
    """Pure-JAX reference mirroring the PyTorch code line by line."""
    N = adj.shape[0]
    k = W.shape[0]
    A = adj.astype(feat.dtype)
    deg = jnp.maximum(jnp.sum(A, axis=1), 1.0)
    dinv = 1.0 / jnp.sqrt(deg)
    D_invsqrt = jnp.diag(dinv)
    I = jnp.eye(N, dtype=A.dtype)
    L = I - D_invsqrt @ A @ D_invsqrt
    L_hat = 2 * L / lambda_max - I
    Z = [jnp.eye(N, dtype=A.dtype)]
    for i in range(1, k):
        if i == 1:
            Z.append(L_hat)
        else:
            Z.append(2 * L_hat @ Z[-1] - Z[-2])
    Zs = jnp.stack(Z, 0)
    Zh = (Zs @ feat[None] @ W).sum(0)
    return Zh + bias


if __name__ == "__main__":
    N, D_IN, D_OUT, K = 16, 8, 32, 3

    key = jax.random.PRNGKey(0)
    k_adj, k_feat, k_w = jax.random.split(key, 3)

    # Symmetric 0/1 adjacency (dense graph).
    a = (jax.random.uniform(k_adj, (N, N)) > 0.5).astype(jnp.float32)
    adj = jnp.maximum(a, a.T)

    feat = jax.random.normal(k_feat, (N, D_IN), dtype=jnp.float32)

    # Deterministic xavier_normal_ init with gain = calculate_gain('relu') = sqrt(2).
    gain = jnp.sqrt(2.0)
    std = gain * jnp.sqrt(2.0 / (D_IN + D_OUT))
    W = std * jax.random.normal(k_w, (K, D_IN, D_OUT), dtype=jnp.float32)
    bias = jnp.zeros((D_OUT,), dtype=jnp.float32)

    out = dense_cheb_conv(adj, feat, W, bias, lambda_max=None)
    out = jax.block_until_ready(out)
    assert out.shape == (N, D_OUT)

    # Reference check (exact lambda_max for the symmetric test graph).
    deg = jnp.maximum(jnp.sum(adj, axis=1), 1.0)
    dinv = 1.0 / jnp.sqrt(deg)
    L = jnp.eye(N) - dinv[:, None] * adj * dinv[None, :]
    lam = jnp.max(jnp.linalg.eigvalsh(L))
    ref = _reference(adj, feat, W, bias, lam)
    assert jnp.allclose(out, ref, atol=1e-4, rtol=1e-4), (
        float(jnp.max(jnp.abs(out - ref))))

    # bf16 MXU-operand variant (f32 d-scaling + f32 accumulation).
    out_bf16 = dense_cheb_conv(adj, feat, W, bias, lambda_max=None,
                               mxu_dtype=jnp.bfloat16)
    out_bf16 = jax.block_until_ready(out_bf16)
    rel = float(jnp.linalg.norm(out_bf16 - ref) / jnp.linalg.norm(ref))
    assert rel < 5e-2, rel

    print("KERNEL_OK")
</pallas_src>

<mosaic_0001>
module attributes {stable_mosaic.version = 11 : i64} {
  func.func @_prop_kernel(%arg0: i32, %arg1: i32, %arg2: memref<1x3xf32, #tpu.memory_space<vmem>>, %arg3: memref<128x1xf32, #tpu.memory_space<vmem>>, %arg4: memref<128x1xf32, #tpu.memory_space<vmem>>, %arg5: memref<128x128xf32, #tpu.memory_space<vmem>>, %arg6: memref<128x8xf32, #tpu.memory_space<vmem>>, %arg7: memref<128x8xf32, #tpu.memory_space<vmem>>, %arg8: memref<128x8xf32, #tpu.memory_space<vmem>>, %arg9: memref<128x8xf32, #tpu.memory_space<vmem>>, %arg10: memref<128x8xf32, #tpu.memory_space<vmem>>) attributes {dimension_semantics = [#tpu.dimension_semantics<parallel>, #tpu.dimension_semantics<arbitrary>], iteration_bounds = array<i64: 1, 1>, scalar_prefetch = 0 : i64, scratch_operands = 1 : i64, tpu.core_type = #tpu.core_type<tc>, window_params = [{pipeline_mode = #tpu.pipeline_mode<synchronous>, transform_indices = @transform_0, window_bounds = array<i64: 1, 3>}, {transform_indices = @transform_1, window_bounds = array<i64: 128, 1>}, {transform_indices = @transform_2, window_bounds = array<i64: 128, 1>}, {transform_indices = @transform_3, window_bounds = array<i64: 128, 128>}, {transform_indices = @transform_4, window_bounds = array<i64: 128, 8>}, {transform_indices = @transform_5, window_bounds = array<i64: 128, 8>}, {transform_indices = @transform_6, window_bounds = array<i64: 128, 8>}, {transform_indices = @transform_7, window_bounds = array<i64: 128, 8>}]} {
    %c0_i32 = arith.constant 0 : i32
    %0 = arith.cmpi eq, %arg1, %c0_i32 : i32
    %1 = arith.extui %0 : i1 to i32
    %c0_i32_0 = arith.constant 0 : i32
    %2 = arith.cmpi ne, %1, %c0_i32_0 : i32
    scf.if %2 {
      %cst_12 = arith.constant 0.000000e+00 : f32
      %15 = vector.broadcast %cst_12 : f32 to vector<128x8xf32>
      %c0_13 = arith.constant 0 : index
      %c0_14 = arith.constant 0 : index
      %16 = vector.load %arg10[%c0_13, %c0_14] : memref<128x8xf32, #tpu.memory_space<vmem>>, vector<128x8xf32>
      tpu.vector_store %arg10[%c0_13, %c0_14], %15 {strides = array<i32>} : memref<128x8xf32, #tpu.memory_space<vmem>>, vector<128x8xf32>,
    } else {
    }
    %c0 = arith.constant 0 : index
    %c0_1 = arith.constant 0 : index
    %3 = vector.load %arg3[%c0, %c0_1] : memref<128x1xf32, #tpu.memory_space<vmem>>, vector<128x1xf32>
    %c0_2 = arith.constant 0 : index
    %c0_3 = arith.constant 0 : index
    %4 = vector.load %arg6[%c0_2, %c0_3] : memref<128x8xf32, #tpu.memory_space<vmem>>, vector<128x8xf32>
    %5 = vector.broadcast %3 : vector<128x1xf32> to vector<128x8xf32>
    %6 = arith.mulf %5, %4 : vector<128x8xf32>
    %c0_4 = arith.constant 0 : index
    %c0_5 = arith.constant 0 : index
    %7 = vector.load %arg10[%c0_4, %c0_5] : memref<128x8xf32, #tpu.memory_space<vmem>>, vector<128x8xf32>
    %c0_6 = arith.constant 0 : index
    %c0_7 = arith.constant 0 : index
    %8 = vector.load %arg5[%c0_6, %c0_7] : memref<128x128xf32, #tpu.memory_space<vmem>>, vector<128x128xf32>
    %cst = arith.constant dense<0.000000e+00> : vector<128x8xf32>
    %9 = tpu.matmul %8, %6, %cst {dimension_numbers = #tpu.dot_dimension_numbers<[1], [0], [0], [1], [0, 0, 1, 1], [], []>} : vector<128x128xf32>, vector<128x8xf32>, vector<128x8xf32> -> vector<128x8xf32>
    %10 = arith.addf %7, %9 : vector<128x8xf32>
    %c0_8 = arith.constant 0 : index
    %c0_9 = arith.constant 0 : index
    %11 = vector.load %arg10[%c0_8, %c0_9] : memref<128x8xf32, #tpu.memory_space<vmem>>, vector<128x8xf32>
    tpu.vector_store %arg10[%c0_8, %c0_9], %10 {strides = array<i32>} : memref<128x8xf32, #tpu.memory_space<vmem>>, vector<128x8xf32>,
    %c0_i32_10 = arith.constant 0 : i32
    %12 = arith.cmpi eq, %arg1, %c0_i32_10 : i32
    %13 = arith.extui %12 : i1 to i32
    %c0_i32_11 = arith.constant 0 : i32
    %14 = arith.cmpi ne, %13, %c0_i32_11 : i32
    scf.if %14 {
      %c0_12 = arith.constant 0 : index
      %c0_13 = arith.constant 0 : index
      %15 = vector.load %arg2[%c0_12, %c0_13] : memref<1x3xf32, #tpu.memory_space<vmem>>, vector<1x1xf32>
      %16 = vector.extract %15[0, 0] : f32 from vector<1x1xf32>
      %c0_14 = arith.constant 0 : index
      %c1 = arith.constant 1 : index
      %17 = vector.load %arg2[%c0_14, %c1] : memref<1x3xf32, #tpu.memory_space<vmem>>, vector<1x1xf32>
      %18 = vector.extract %17[0, 0] : f32 from vector<1x1xf32>
      %c0_15 = arith.constant 0 : index
      %c2 = arith.constant 2 : index
      %19 = vector.load %arg2[%c0_15, %c2] : memref<1x3xf32, #tpu.memory_space<vmem>>, vector<1x1xf32>
      %20 = vector.extract %19[0, 0] : f32 from vector<1x1xf32>
      %c0_16 = arith.constant 0 : index
      %c0_17 = arith.constant 0 : index
      %21 = vector.load %arg4[%c0_16, %c0_17] : memref<128x1xf32, #tpu.memory_space<vmem>>, vector<128x1xf32>
      %c0_18 = arith.constant 0 : index
      %c0_19 = arith.constant 0 : index
      %22 = vector.load %arg10[%c0_18, %c0_19] : memref<128x8xf32, #tpu.memory_space<vmem>>, vector<128x8xf32>
      %23 = vector.broadcast %21 : vector<128x1xf32> to vector<128x8xf32>
      %24 = arith.mulf %23, %22 : vector<128x8xf32>
      %25 = vector.broadcast %16 : f32 to vector<128x8xf32>
      %26 = arith.mulf %25, %24 : vector<128x8xf32>
      %c0_20 = arith.constant 0 : index
      %c0_21 = arith.constant 0 : index
      %27 = vector.load %arg7[%c0_20, %c0_21] : memref<128x8xf32, #tpu.memory_space<vmem>>, vector<128x8xf32>
      %28 = vector.broadcast %18 : f32 to vector<128x8xf32>
      %29 = arith.mulf %28, %27 : vector<128x8xf32>
      %30 = arith.addf %26, %29 : vector<128x8xf32>
      %c0_22 = arith.constant 0 : index
      %c0_23 = arith.constant 0 : index
      %31 = vector.load %arg8[%c0_22, %c0_23] : memref<128x8xf32, #tpu.memory_space<vmem>>, vector<128x8xf32>
      %32 = vector.broadcast %20 : f32 to vector<128x8xf32>
      %33 = arith.mulf %32, %31 : vector<128x8xf32>
      %34 = arith.addf %30, %33 : vector<128x8xf32>
      %c0_24 = arith.constant 0 : index
      %c0_25 = arith.constant 0 : index
      %35 = vector.load %arg9[%c0_24, %c0_25] : memref<128x8xf32, #tpu.memory_space<vmem>>, vector<128x8xf32>
      tpu.vector_store %arg9[%c0_24, %c0_25], %34 {strides = array<i32>} : memref<128x8xf32, #tpu.memory_space<vmem>>, vector<128x8xf32>,
    } else {
    }
    return
  }
  func.func @transform_0(%arg0: i32, %arg1: i32) -> (i32, i32) {
    %c0_i32 = arith.constant 0 : i32
    %c0_i32_0 = arith.constant 0 : i32
    %c0_i32_1 = arith.constant 0 : i32
    return %c0_i32, %c0_i32_0 : i32, i32
  }
  func.func @transform_1(%arg0: i32, %arg1: i32) -> (i32, i32) {
    %c0_i32 = arith.constant 0 : i32
    %c0_i32_0 = arith.constant 0 : i32
    return %arg1, %c0_i32 : i32, i32
  }
  func.func @transform_2(%arg0: i32, %arg1: i32) -> (i32, i32) {
    %c0_i32 = arith.constant 0 : i32
    %c0_i32_0 = arith.constant 0 : i32
    return %arg0, %c0_i32 : i32, i32
  }
  func.func @transform_3(%arg0: i32, %arg1: i32) -> (i32, i32) {
    %c0_i32 = arith.constant 0 : i32
    return %arg0, %arg1 : i32, i32
  }
  func.func @transform_4(%arg0: i32, %arg1: i32) -> (i32, i32) {
    %c0_i32 = arith.constant 0 : i32
    %c0_i32_0 = arith.constant 0 : i32
    return %arg1, %c0_i32 : i32, i32
  }
  func.func @transform_5(%arg0: i32, %arg1: i32) -> (i32, i32) {
    %c0_i32 = arith.constant 0 : i32
    %c0_i32_0 = arith.constant 0 : i32
    return %arg0, %c0_i32 : i32, i32
  }
  func.func @transform_6(%arg0: i32, %arg1: i32) -> (i32, i32) {
    %c0_i32 = arith.constant 0 : i32
    %c0_i32_0 = arith.constant 0 : i32
    return %arg0, %c0_i32 : i32, i32
  }
  func.func @transform_7(%arg0: i32, %arg1: i32) -> (i32, i32) {
    %c0_i32 = arith.constant 0 : i32
    %c0_i32_0 = arith.constant 0 : i32
    return %arg0, %c0_i32 : i32, i32
  }
}

</mosaic_0001>

<bundles_post_ra>
// kernel: tpu_custom_call.1
= control target key start
LH: loop header
LB: loop body
LE: loop exit
PB: predicated region body
PF: predicated region fallthrough
CT: control target
= control target key end

     0   :  { %v794_v0 = vmov 0   ;;  %s795_s15 = smov 126   ;;  %s796_s16 = smov 127   ;;  %vm30_vm0 = vcmask 64512   ;;  %v797_v34 = vmov 0.0   ;;  %s1393_s1 = inlined_call_operand.vmem [shape: f32[128,1], index: 1, kind: input, shape index: {}]   ;;  %s1394_s0 = inlined_call_operand.vmem [shape: f32[1,3], index: 0, kind: input, shape index: {}]   ;;  %s1395_s3 = inlined_call_operand.vmem [shape: f32[128,128], index: 3, kind: input, shape index: {}]   ;;  %s1396_s2 = inlined_call_operand.vmem [shape: f32[128,1], index: 2, kind: input, shape index: {}]   ;;  %s1397_s4 = inlined_call_operand.vmem [shape: f32[128,8], index: 4, kind: input, shape index: {}]   ;;  %s1398_s5 = inlined_call_operand.vmem [shape: f32[128,8], index: 5, kind: input, shape index: {}]   ;;  %s1399_s6 = inlined_call_operand.vmem [shape: f32[128,8], index: 6, kind: input, shape index: {}]   ;;  %s1400_s7 = inlined_call_operand.vmem [shape: f32[128,8], index: 7, kind: output, shape index: {}]  }
   0x1   :  { %793 = vset.pattern.permute.xlu1 %v794_v0  ;;  %792 = vset.pattern.permute.xlu0 %v794_v0  ;;  %v62_v1 = vld [vmem:[%s1393_s1 + $0x78] sm:$0xff]  ;;  %v60_v2 = vld [vmem:[%s1393_s1 + $0x68] sm:$0xff]  ;;  %v61_v3 = vld [vmem:[%s1393_s1 + $0x70] sm:$0xff]  ;;  %32 = vst.msk [vmem:[#allocation2 + $0x8] sm:$0xff] %vm30_vm0, %v797_v34 }
   0x2   :  { %156 = vperm.xlu0 %792, %v62_v1   ;;  %146 = vperm.xlu1 %793, %v60_v2   ;;  %v59_v4 = vld [vmem:[%s1393_s1 + $0x60] sm:$0xff]  ;;  %v58_v6 = vld [vmem:[%s1393_s1 + $0x58] sm:$0xff]  ;;  %v57_v7 = vld [vmem:[%s1393_s1 + $0x50] sm:$0xff]  ;;  %31 = vst.msk [vmem:[#allocation2] sm:$0xff] %vm30_vm0, %v797_v34 }
   0x3   :  { %v388_v5 = vld [vmem:[%s1394_s0] sm:$0x1]  ;;  %v56_v8 = vld [vmem:[%s1393_s1 + $0x48] sm:$0xff]  ;;  %v54_v10 = vld [vmem:[%s1393_s1 + $0x38] sm:$0xff]  ;;  %33 = vst.msk [vmem:[#allocation2 + $0x10] sm:$0xff] %vm30_vm0, %v797_v34 }
   0x4   :  { %782 = vpush %v388_v5  ;;  %v55_v9 = vld [vmem:[%s1393_s1 + $0x40] sm:$0xff]  ;;  %v53_v11 = vld [vmem:[%s1393_s1 + $0x30] sm:$0xff]  ;;  %v52_v12 = vld [vmem:[%s1393_s1 + $0x28] sm:$0xff] }
   0x5   :  { %v51_v13 = vld [vmem:[%s1393_s1 + $0x20] sm:$0xff]  ;;  %v50_v14 = vld [vmem:[%s1393_s1 + $0x18] sm:$0xff]  ;;  %v49_v15 = vld [vmem:[%s1393_s1 + $0x10] sm:$0xff]  ;;  %34 = vst.msk [vmem:[#allocation2 + $0x18] sm:$0xff] %vm30_vm0, %v797_v34 }
   0x6   :  { %151 = vperm.xlu0 %792, %v61_v3   ;;  %141 = vperm.xlu1 %793, %v59_v4   ;;  %v48_v16 = vld [vmem:[%s1393_s1 + $0x8] sm:$0xff]  ;;  %v47_v17 = vld [vmem:[%s1393_s1] sm:$0xff]  ;;  %v402_v22 = vld [vmem:[%s1396_s2 + $0x18] sm:$0xff]  ;;  %35 = vst.msk [vmem:[#allocation2 + $0x20] sm:$0xff] %vm30_vm0, %v797_v34 }
   0x7   :  { %v191_v18 = vld [vmem:[%s1395_s3] sm:$0xff]  ;;  %v400_v20 = vld [vmem:[%s1396_s2 + $0x8] sm:$0xff]  ;;  %v401_v23 = vld [vmem:[%s1396_s2 + $0x10] sm:$0xff]  ;;  %36 = vst.msk [vmem:[#allocation2 + $0x28] sm:$0xff] %vm30_vm0, %v797_v34 }
   0x8   :  { %v199_v19 = vld [vmem:[%s1395_s3 + $0x40] sm:$0xff]  ;;  %726 = vmatprep.mubr.f32.mxu0 %v191_v18  ;;  %v404_v24 = vld [vmem:[%s1396_s2 + $0x28] sm:$0xff]  ;;  %v406_v26 = vld [vmem:[%s1396_s2 + $0x38] sm:$0xff]  ;;  %37 = vst.msk [vmem:[#allocation2 + $0x30] sm:$0xff] %vm30_vm0, %v797_v34 }
   0x9   :  { %738 = vmatprep.mubr.f32.mxu1 %v199_v19  ;;  %v399_v21 = vld [vmem:[%s1396_s2] sm:$0xff]  ;;  %v405_v27 = vld [vmem:[%s1396_s2 + $0x30] sm:$0xff]  ;;  %v408_v28 = vld [vmem:[%s1396_s2 + $0x48] sm:$0xff]  ;;  %38 = vst.msk [vmem:[#allocation2 + $0x38] sm:$0xff] %vm30_vm0, %v797_v34 }
   0xa   :  { %136 = vperm.xlu0 %792, %v58_v6   ;;  %131 = vperm.xlu1 %793, %v57_v7   ;;  %v403_v25 = vld [vmem:[%s1396_s2 + $0x20] sm:$0xff]  ;;  %v410_v30 = vld [vmem:[%s1396_s2 + $0x58] sm:$0xff]  ;;  %v409_v31 = vld [vmem:[%s1396_s2 + $0x50] sm:$0xff]  ;;  %39 = vst.msk [vmem:[#allocation2 + $0x40] sm:$0xff] %vm30_vm0, %v797_v34 }
   0xb   :  { %v407_v29 = vld [vmem:[%s1396_s2 + $0x40] sm:$0xff]  ;;  %v412_v32 = vld [vmem:[%s1396_s2 + $0x68] sm:$0xff]  ;;  %40 = vst.msk [vmem:[#allocation2 + $0x48] sm:$0xff] %vm30_vm0, %v797_v34  ;;  %41 = vst.msk [vmem:[#allocation2 + $0x50] sm:$0xff] %vm30_vm0, %v797_v34 }
   0xc   :  { %v411_v33 = vld [vmem:[%s1396_s2 + $0x60] sm:$0xff]  ;;  %42 = vst.msk [vmem:[#allocation2 + $0x58] sm:$0xff] %vm30_vm0, %v797_v34  ;;  %43 = vst.msk [vmem:[#allocation2 + $0x60] sm:$0xff] %vm30_vm0, %v797_v34  ;;  %v414_v35 = vld [vmem:[%s1396_s2 + $0x78] sm:$0xff] }
   0xd   :  { %44 = vst.msk [vmem:[#allocation2 + $0x68] sm:$0xff] %vm30_vm0, %v797_v34  ;;  %45 = vst.msk [vmem:[#allocation2 + $0x70] sm:$0xff] %vm30_vm0, %v797_v34  ;;  %v413_v36 = vld [vmem:[%s1396_s2 + $0x70] sm:$0xff]  ;;  %v78_v37 = vld [vmem:[%s1397_s4 + $0x78] sm:$0xff] }
   0xe   :  { %126 = vperm.xlu0 %792, %v56_v8   ;;  %121 = vperm.xlu1 %793, %v55_v9   ;;  %46 = vst.msk [vmem:[#allocation2 + $0x78] sm:$0xff] %vm30_vm0, %v797_v34  ;;  %v77_v41 = vld [vmem:[%s1397_s4 + $0x70] sm:$0xff]  ;;  %v76_v42 = vld [vmem:[%s1397_s4 + $0x68] sm:$0xff]  ;;  %v75_v46 = vld [vmem:[%s1397_s4 + $0x60] sm:$0xff] }
   0xf   :  { %v74_v48 = vld [vmem:[%s1397_s4 + $0x58] sm:$0xff]  ;;  %v73_v52 = vld [vmem:[%s1397_s4 + $0x50] sm:$0xff]  ;;  %v72_v54 = vld [vmem:[%s1397_s4 + $0x48] sm:$0xff] }
  0x10   :  { %v71_v58 = vld [vmem:[%s1397_s4 + $0x40] sm:$0xff]  ;;  %v70_v60 = vld [vmem:[%s1397_s4 + $0x38] sm:$0xff]  ;;  %v69_v0 = vld [vmem:[%s1397_s4 + $0x30] sm:$0xff] }
  0x11   :  { %v68_v2 = vld [vmem:[%s1397_s4 + $0x28] sm:$0xff]  ;;  %v67_v6 = vld [vmem:[%s1397_s4 + $0x20] sm:$0xff]  ;;  %v66_v8 = vld [vmem:[%s1397_s4 + $0x18] sm:$0xff] }
  0x12   :  { %116 = vperm.xlu0 %792, %v54_v10   ;;  %111 = vperm.xlu1 %793, %v53_v11   ;;  %v63_v18 = vld [vmem:[%s1397_s4] sm:$0xff]  ;;  %v205_v34 = vld [vmem:[%s1395_s3 + $0x70] sm:$0xff] }
  0x16   :  { %106 = vperm.xlu0 %792, %v52_v12   ;;  %101 = vperm.xlu1 %793, %v51_v13   ;;  %v65_v12 = vld [vmem:[%s1397_s4 + $0x10] sm:$0xff] }
  0x1a   :  { %96 = vperm.xlu0 %792, %v50_v14   ;;  %91 = vperm.xlu1 %793, %v49_v15   ;;  %v64_v14 = vld [vmem:[%s1397_s4 + $0x8] sm:$0xff] }
  0x1e   :  { %86 = vperm.xlu0 %792, %v48_v16   ;;  %81 = vperm.xlu1 %793, %v47_v17  }
  0x22   :  { %395 = vrot.lane.b32.xlu1 %v388_v5, %s795_s15  ;;  %391 = vrot.lane.b32.xlu0 %v388_v5, %s796_s16 }
  0x26   :  { %438 = vperm.xlu1 %793, %v400_v20   ;;  %433 = vperm.xlu0 %792, %v399_v21  }
  0x2a   :  { %448 = vperm.xlu1 %793, %v402_v22   ;;  %443 = vperm.xlu0 %792, %v401_v23   ;;  %v192_v23 = vld [vmem:[%s1395_s3 + $0x8] sm:$0xff] }
  0x2e   :  { %458 = vperm.xlu1 %793, %v404_v24   ;;  %453 = vperm.xlu0 %792, %v403_v25   ;;  %v200_v24 = vld [vmem:[%s1395_s3 + $0x48] sm:$0xff]  ;;  %v193_v25 = vld [vmem:[%s1395_s3 + $0x10] sm:$0xff] }
  0x32   :  { %468 = vperm.xlu1 %793, %v406_v26   ;;  %463 = vperm.xlu0 %792, %v405_v27   ;;  %v201_v26 = vld [vmem:[%s1395_s3 + $0x50] sm:$0xff]  ;;  %v194_v27 = vld [vmem:[%s1395_s3 + $0x18] sm:$0xff] }
  0x35   :  { %s783_s28 = spop %782 }
  0x36   :  { %478 = vperm.xlu1 %793, %v408_v28   ;;  %473 = vperm.xlu0 %792, %v407_v29   ;;  %v202_v28 = vld [vmem:[%s1395_s3 + $0x58] sm:$0xff]  ;;  %v195_v29 = vld [vmem:[%s1395_s3 + $0x20] sm:$0xff] }
  0x3a   :  { %488 = vperm.xlu1 %793, %v410_v30   ;;  %483 = vperm.xlu0 %792, %v409_v31   ;;  %v203_v30 = vld [vmem:[%s1395_s3 + $0x60] sm:$0xff]  ;;  %v196_v31 = vld [vmem:[%s1395_s3 + $0x28] sm:$0xff] }
  0x3e   :  { %498 = vperm.xlu1 %793, %v412_v32   ;;  %493 = vperm.xlu0 %792, %v411_v33   ;;  %v204_v32 = vld [vmem:[%s1395_s3 + $0x68] sm:$0xff]  ;;  %v197_v33 = vld [vmem:[%s1395_s3 + $0x30] sm:$0xff] }
  0x42   :  { %508 = vperm.xlu1 %793, %v414_v35   ;;  %503 = vperm.xlu0 %792, %v413_v36   ;;  %v198_v35 = vld [vmem:[%s1395_s3 + $0x38] sm:$0xff] }
  0x43   :  { %v206_v36 = vld [vmem:[%s1395_s3 + $0x78] sm:$0xff] }
  0x7d   :  { %v157_v38 = vpop.permute.xlu0 %156  ;;  %v147_v39 = vpop.permute.xlu1 %146 }
  0x7e   :  { %v174_v40 = vmul.f32 %v157_v38, %v78_v37  ;;  %v172_v47 = vmul.f32 %v147_v39, %v76_v42 }
  0x80   :  { %694 = vmatprep.subr.mxu0 %v174_v40  ;;  %750 = vmatprep.subr.mxu1 %v174_v40 }
  0x81   :  { %695 = vmatpush3.msra.mxu0 %v174_v40  ;;  %766 = vmatpush3.msra.mxu1 %v174_v40  ;;  %v152_v43 = vpop.permute.xlu0 %151  ;;  %v142_v44 = vpop.permute.xlu1 %141 }
  0x82   :  { %v173_v45 = vmul.f32 %v152_v43, %v77_v41  ;;  %v171_v51 = vmul.f32 %v142_v44, %v75_v46  ;;  %v176_v43 = vld [vmem:[#allocation2 + $0x8] sm:$0xff]  ;;  %v175_v46 = vld [vmem:[#allocation2] sm:$0xff] }
  0x83   :  { %v184_v44 = vld [vmem:[#allocation2 + $0x48] sm:$0xff] }
  0x84   :  { %696 = vmatprep.subr.mxu0 %v173_v45  ;;  %751 = vmatprep.subr.mxu1 %v173_v45 }
  0x85   :  { %697 = vmatpush3.msra.mxu0 %v173_v45  ;;  %767 = vmatpush3.msra.mxu1 %v173_v45  ;;  %v137_v49 = vpop.permute.xlu0 %136  ;;  %v132_v50 = vpop.permute.xlu1 %131 }
  0x86   :  { %698 = vmatprep.subr.mxu0 %v172_v47  ;;  %752 = vmatprep.subr.mxu1 %v172_v47  ;;  %v170_v53 = vmul.f32 %v137_v49, %v74_v48  ;;  %v169_v57 = vmul.f32 %v132_v50, %v73_v52  ;;  %v178_v50 = vld [vmem:[#allocation2 + $0x18] sm:$0xff]  ;;  %v544_v52 = vld [vmem:[%s1398_s5] sm:$0xff] }
  0x87   :  { %699 = vmatpush3.msra.mxu0 %v172_v47  ;;  %768 = vmatpush3.msra.mxu1 %v172_v47  ;;  %v183_v47 = vld [vmem:[#allocation2 + $0x40] sm:$0xff] }
  0x88   :  { %700 = vmatprep.subr.mxu0 %v171_v51  ;;  %753 = vmatprep.subr.mxu1 %v171_v51 }
  0x89   :  { %701 = vmatpush3.msra.mxu0 %v171_v51  ;;  %769 = vmatpush3.msra.mxu1 %v171_v51  ;;  %v127_v55 = vpop.permute.xlu0 %126  ;;  %v122_v56 = vpop.permute.xlu1 %121  ;;  %v186_v51 = vld [vmem:[#allocation2 + $0x58] sm:$0xff] }
  0x8a   :  { %702 = vmatprep.subr.mxu0 %v170_v53  ;;  %754 = vmatprep.subr.mxu1 %v170_v53  ;;  %v168_v59 = vmul.f32 %v127_v55, %v72_v54  ;;  %v167_v63 = vmul.f32 %v122_v56, %v71_v58  ;;  %v553_v54 = vld [vmem:[%s1398_s5 + $0x48] sm:$0xff] }
  0x8b   :  { %703 = vmatpush3.msra.mxu0 %v170_v53  ;;  %770 = vmatpush3.msra.mxu1 %v170_v53  ;;  %v545_v53 = vld [vmem:[%s1398_s5 + $0x8] sm:$0xff] }
  0x8c   :  { %704 = vmatprep.subr.mxu0 %v169_v57  ;;  %755 = vmatprep.subr.mxu1 %v169_v57 }
  0x8d   :  { %705 = vmatpush3.msra.mxu0 %v169_v57  ;;  %771 = vmatpush3.msra.mxu1 %v169_v57  ;;  %v117_v61 = vpop.permute.xlu0 %116  ;;  %v112_v62 = vpop.permute.xlu1 %111 }
  0x8e   :  { %706 = vmatprep.subr.mxu0 %v168_v59  ;;  %756 = vmatprep.subr.mxu1 %v168_v59  ;;  %v166_v1 = vmul.f32 %v117_v61, %v70_v60  ;;  %v165_v5 = vmul.f32 %v112_v62, %v69_v0  ;;  %v594_v60 = vld [vmem:[%s1399_s6 + $0x8] sm:$0xff] }
  0x8f   :  { %707 = vmatpush3.msra.mxu0 %v168_v59  ;;  %772 = vmatpush3.msra.mxu1 %v168_v59  ;;  %v552_v59 = vld [vmem:[%s1398_s5 + $0x40] sm:$0xff]  ;;  %v602_v61 = vld [vmem:[%s1399_s6 + $0x48] sm:$0xff] }
  0x90   :  { %708 = vmatprep.subr.mxu0 %v167_v63  ;;  %757 = vmatprep.subr.mxu1 %v167_v63 }
  0x91   :  { %709 = vmatpush3.msra.mxu0 %v167_v63  ;;  %773 = vmatpush3.msra.mxu1 %v167_v63  ;;  %v107_v3 = vpop.permute.xlu0 %106  ;;  %v102_v4 = vpop.permute.xlu1 %101 }
  0x92   :  { %710 = vmatprep.subr.mxu0 %v166_v1  ;;  %758 = vmatprep.subr.mxu1 %v166_v1  ;;  %v164_v7 = vmul.f32 %v107_v3, %v68_v2  ;;  %v163_v11 = vmul.f32 %v102_v4, %v67_v6  ;;  %v185_v2 = vld [vmem:[#allocation2 + $0x50] sm:$0xff]  ;;  %v1087_v3 = vstv %s783_s28  ;;  %v547_v4 = vld [vmem:[%s1398_s5 + $0x18] sm:$0xff]  ;;  %v593_v6 = vld [vmem:[%s1399_s6] sm:$0xff] }
  0x93   :  { %711 = vmatpush3.msra.mxu0 %v166_v1  ;;  %774 = vmatpush3.msra.mxu1 %v166_v1  ;;  %v177_v1 = vld [vmem:[#allocation2 + $0x10] sm:$0xff] }
  0x94   :  { %712 = vmatprep.subr.mxu0 %v165_v5  ;;  %759 = vmatprep.subr.mxu1 %v165_v5 }
  0x95   :  { %713 = vmatpush3.msra.mxu0 %v165_v5  ;;  %775 = vmatpush3.msra.mxu1 %v165_v5  ;;  %v97_v9 = vpop.permute.xlu0 %96  ;;  %v92_v10 = vpop.permute.xlu1 %91  ;;  %v555_v5 = vld [vmem:[%s1398_s5 + $0x58] sm:$0xff] }
  0x96   :  { %714 = vmatprep.subr.mxu0 %v164_v7  ;;  %760 = vmatprep.subr.mxu1 %v164_v7  ;;  %v162_v13 = vmul.f32 %v97_v9, %v66_v8  ;;  %v161_v17 = vmul.f32 %v92_v10, %v65_v12  ;;  %v546_v9 = vld [vmem:[%s1398_s5 + $0x10] sm:$0xff] }
  0x97   :  { %715 = vmatpush3.msra.mxu0 %v164_v7  ;;  %776 = vmatpush3.msra.mxu1 %v164_v7  ;;  %v554_v10 = vld [vmem:[%s1398_s5 + $0x50] sm:$0xff] }
  0x98   :  { %716 = vmatprep.subr.mxu0 %v163_v11  ;;  %761 = vmatprep.subr.mxu1 %v163_v11 }
  0x99   :  { %717 = vmatpush3.msra.mxu0 %v163_v11  ;;  %777 = vmatpush3.msra.mxu1 %v163_v11  ;;  %v87_v15 = vpop.permute.xlu0 %86  ;;  %v82_v16 = vpop.permute.xlu1 %81 }
  0x9a   :  { %718 = vmatprep.subr.mxu0 %v162_v13  ;;  %762 = vmatprep.subr.mxu1 %v162_v13  ;;  %v160_v19 = vmul.f32 %v87_v15, %v64_v14  ;;  %v159_v21 = vmul.f32 %v82_v16, %v63_v18  ;;  %v180_v16 = vld [vmem:[#allocation2 + $0x28] sm:$0xff] }
  0x9b   :  { %719 = vmatpush3.msra.mxu0 %v162_v13  ;;  %778 = vmatpush3.msra.mxu1 %v162_v13  ;;  %v601_v13 = vld [vmem:[%s1399_s6 + $0x40] sm:$0xff]  ;;  %v549_v18 = vld [vmem:[%s1398_s5 + $0x28] sm:$0xff] }
  0x9c   :  { %720 = vmatprep.subr.mxu0 %v161_v17  ;;  %763 = vmatprep.subr.mxu1 %v161_v17 }
  0x9d   :  { %721 = vmatpush3.msra.mxu0 %v161_v17  ;;  %779 = vmatpush3.msra.mxu1 %v161_v17  ;;  %v392_v20 = vpop.permute.xlu0 %391  ;;  %v396_v22 = vpop.permute.xlu1 %395  ;;  %v188_v17 = vld [vmem:[#allocation2 + $0x68] sm:$0xff] }
  0x9e   :  { %722 = vmatprep.subr.mxu0 %v160_v19  ;;  %764 = vmatprep.subr.mxu1 %v160_v19  ;;  %784 = vpush %v392_v20 }
  0x9f   :  { %723 = vmatpush3.msra.mxu0 %v160_v19  ;;  %780 = vmatpush3.msra.mxu1 %v160_v19  ;;  %786 = vpush %v396_v22  ;;  %v604_v22 = vld [vmem:[%s1399_s6 + $0x58] sm:$0xff] }
  0xa0   :  { %724 = vmatprep.subr.mxu0 %v159_v21  ;;  %765 = vmatprep.subr.mxu1 %v159_v21 }
  0xa1   :  { %725 = vmatpush3.msra.mxu0 %v159_v21  ;;  %781 = vmatpush3.msra.mxu1 %v159_v21  ;;  %v1049_v37 = vpop.permute.xlu1 %438  ;;  %v1051_v38 = vpop.permute.xlu0 %433  ;;  %v596_v21 = vld [vmem:[%s1399_s6 + $0x18] sm:$0xff] }
  0xa2   :  { %727 = vmatmul.mubr.f32.vlgmr.msra.gmra.mxu0 %v192_v23  ;;  %739 = vmatmul.mubr.f32.vlgmr.msra.gmra.mxu1 %v200_v24 }
  0xa3   :  { %729 = vmatprep.mubr.f32.mxu0 %v193_v25  ;;  %741 = vmatprep.mubr.f32.mxu1 %v201_v26 }
  0xa5   :  { %v1053_v39 = vpop.permute.xlu1 %448  ;;  %v1055_v40 = vpop.permute.xlu0 %443 }
  0xa6   :  { %730 = vmatmul.mubr.f32.gmra.mxu0 %v194_v27  ;;  %742 = vmatmul.mubr.f32.gmra.mxu1 %v202_v28  ;;  %v557_v28 = vld [vmem:[%s1398_s5 + $0x68] sm:$0xff] }
  0xa7   :  { %732 = vmatprep.mubr.f32.mxu0 %v195_v29  ;;  %744 = vmatprep.mubr.f32.mxu1 %v203_v30 }
  0xa9   :  { %v1057_v41 = vpop.permute.xlu1 %458  ;;  %v1059_v42 = vpop.permute.xlu0 %453 }
  0xaa   :  { %733 = vmatmul.mubr.f32.gmra.mxu0 %v196_v31  ;;  %745 = vmatmul.mubr.f32.gmra.mxu1 %v204_v32  ;;  %v595_v31 = vld [vmem:[%s1399_s6 + $0x10] sm:$0xff] }
  0xab   :  { %735 = vmatprep.mubr.f32.mxu0 %v197_v33  ;;  %747 = vmatprep.mubr.f32.mxu1 %v205_v34  ;;  %v603_v32 = vld [vmem:[%s1399_s6 + $0x50] sm:$0xff] }
  0xad   :  { %v1061_v45 = vpop.permute.xlu1 %468  ;;  %v1074_v56 = vpop.permute.xlu0 %463 }
  0xae   :  { %736 = vmatmul.mubr.f32.gmra.mxu0 %v198_v35  ;;  %748 = vmatmul.mubr.f32.gmra.mxu1 %v206_v36  ;;  %v548_v35 = vld [vmem:[%s1398_s5 + $0x20] sm:$0xff] }
  0xaf   :  { %v556_v36 = vld [vmem:[%s1398_s5 + $0x60] sm:$0xff] }
  0xb1   :  { %v479_v25 = vpop.permute.xlu1 %478 }
  0xcf   :  { %s785_s4 = spop %784 }
  0xd0   :  { %s787_s29 = spop %786  ;;  %v1072_v55 = vstv %s785_s4 }
  0xd1   :  { %v1085_v62 = vstv %s787_s29  ;;  %v1107_v11 = vmul.f32 %v1072_v55, %v545_v53  ;;  %v1110_v12 = vmul.f32 %v1072_v55, %v553_v54  ;;  %v1119_v19 = vmul.f32 %v1072_v55, %v544_v52  ;;  %v551_v52 = vld [vmem:[%s1398_s5 + $0x38] sm:$0xff]  ;;  %v606_v54 = vld [vmem:[%s1399_s6 + $0x68] sm:$0xff] }
  0xd2   :  { %v1122_v20 = vmul.f32 %v1072_v55, %v552_v59  ;;  %v1131_v23 = vmul.f32 %v1085_v62, %v594_v60  ;;  %v1134_v24 = vmul.f32 %v1085_v62, %v602_v61  ;;  %v1142_v29 = vmul.f32 %v1072_v55, %v547_v4  ;;  %v559_v53 = vld [vmem:[%s1398_s5 + $0x78] sm:$0xff]  ;;  %v179_v61 = vld [vmem:[#allocation2 + $0x20] sm:$0xff] }
  0xd3   :  { %v1145_v30 = vmul.f32 %v1072_v55, %v555_v5  ;;  %v1201_v4 = vmul.f32 %v1085_v62, %v595_v31  ;;  %v1204_v5 = vmul.f32 %v1085_v62, %v603_v32  ;;  %v489_v31 = vpop.permute.xlu1 %488 }
 0x162   :  { %v728_v48 = vpop.f32.mrf.mxu0  ;;  %v740_v49 = vpop.f32.mrf.mxu1 }
 0x163   :  { %v353_v57 = vadd.f32 %v728_v48, %v176_v43  ;;  %v361_v58 = vadd.f32 %v740_v49, %v184_v44  ;;  %v1160_v43 = vmul.f32 %v1072_v55, %v546_v9  ;;  %v1163_v44 = vmul.f32 %v1072_v55, %v554_v10  ;;  %v474_v49 = vpop.permute.xlu0 %473  ;;  %v600_v10 = vld [vmem:[%s1399_s6 + $0x38] sm:$0xff] }
 0x164   :  { %v273_v63 = vpop.f32.mrf.mxu0  ;;  %v313_v0 = vpop.f32.mrf.mxu1  ;;  %v1172_v48 = vmul.f32 %v1085_v62, %v601_v13  ;;  %v1212_v9 = vmul.f32 %v1072_v55, %v556_v36  ;;  %v605_v13 = vld [vmem:[%s1399_s6 + $0x60] sm:$0xff]  ;;  %v190_v36 = vld [vmem:[#allocation2 + $0x78] sm:$0xff] }
 0x165   :  { %370 = vst.msk [vmem:[#allocation2 + $0x8] sm:$0xff] %vm30_vm0, %v353_v57  ;;  %378 = vst.msk [vmem:[#allocation2 + $0x48] sm:$0xff] %vm30_vm0, %v361_v58  ;;  %v352_v7 = vadd.f32 %v273_v63, %v175_v46  ;;  %v360_v8 = vadd.f32 %v313_v0, %v183_v47  ;;  %v598_v46 = vld [vmem:[%s1399_s6 + $0x28] sm:$0xff]  ;;  %v1169_v47 = vmul.f32 %v1085_v62, %v593_v6  ;;  %v187_v63 = vld [vmem:[#allocation2 + $0x60] sm:$0xff] }
 0x166   :  { %v731_v14 = vpop.f32.mrf.mxu0  ;;  %v743_v15 = vpop.f32.mrf.mxu1  ;;  %v1186_v57 = vmul.f32 %v1085_v62, %v596_v21  ;;  %v1189_v58 = vmul.f32 %v1085_v62, %v604_v22  ;;  %v1192_v0 = vmul.f32 %v1072_v55, %v549_v18  ;;  %v182_v21 = vld [vmem:[#allocation2 + $0x38] sm:$0xff]  ;;  %v1224_v22 = vmul.f32 %v1072_v55, %v551_v52 }
 0x167   :  { %369 = vst.msk [vmem:[#allocation2] sm:$0xff] %vm30_vm0, %v352_v7  ;;  %377 = vst.msk [vmem:[#allocation2 + $0x40] sm:$0xff] %vm30_vm0, %v360_v8  ;;  %v355_v26 = vadd.f32 %v731_v14, %v178_v50  ;;  %v363_v27 = vadd.f32 %v743_v15, %v186_v51  ;;  %v1209_v8 = vmul.f32 %v1072_v55, %v548_v35  ;;  %v608_v14 = vld [vmem:[%s1399_s6 + $0x78] sm:$0xff] }
 0x168   :  { %v283_v33 = vpop.f32.mrf.mxu0  ;;  %v323_v34 = vpop.f32.mrf.mxu1 }
 0x169   :  { %372 = vst.msk [vmem:[#allocation2 + $0x18] sm:$0xff] %vm30_vm0, %v355_v26  ;;  %380 = vst.msk [vmem:[#allocation2 + $0x58] sm:$0xff] %vm30_vm0, %v363_v27  ;;  %v354_v50 = vadd.f32 %v283_v33, %v177_v1  ;;  %v362_v51 = vadd.f32 %v323_v34, %v185_v2  ;;  %v1195_v1 = vmul.f32 %v1072_v55, %v557_v28  ;;  %v597_v2 = vld [vmem:[%s1399_s6 + $0x20] sm:$0xff] }
 0x16a   :  { %v734_v59 = vpop.f32.mrf.mxu0  ;;  %v746_v60 = vpop.f32.mrf.mxu1  ;;  %v1227_v26 = vmul.f32 %v1072_v55, %v559_v53  ;;  %v1230_v27 = vmul.f32 %v1085_v62, %v598_v46  ;;  %v1233_v28 = vmul.f32 %v1085_v62, %v606_v54  ;;  %v558_v46 = vld [vmem:[%s1398_s5 + $0x70] sm:$0xff]  ;;  %v1248_v54 = vmul.f32 %v1085_v62, %v600_v10 }
 0x16b   :  { %371 = vst.msk [vmem:[#allocation2 + $0x10] sm:$0xff] %vm30_vm0, %v354_v50  ;;  %379 = vst.msk [vmem:[#allocation2 + $0x50] sm:$0xff] %vm30_vm0, %v362_v51  ;;  %v357_v6 = vadd.f32 %v734_v59, %v180_v16  ;;  %v365_v7 = vadd.f32 %v746_v60, %v188_v17  ;;  %v550_v50 = vld [vmem:[%s1398_s5 + $0x30] sm:$0xff]  ;;  %v1251_v59 = vmul.f32 %v1085_v62, %v605_v13 }
 0x16c   :  { %v416_v15 = vld [vmem:[#allocation2 + $0x8] sm:$0xff]  ;;  %v293_v17 = vpop.f32.mrf.mxu0  ;;  %v333_v18 = vpop.f32.mrf.mxu1  ;;  %v1254_v60 = vmul.f32 %v1085_v62, %v608_v14  ;;  %v181_v10 = vld [vmem:[#allocation2 + $0x30] sm:$0xff] }
 0x16d   :  { %v424_v16 = vld [vmem:[#allocation2 + $0x48] sm:$0xff]  ;;  %v512_v32 = vmul.f32 %v1049_v37, %v416_v15  ;;  %374 = vst.msk [vmem:[#allocation2 + $0x28] sm:$0xff] %vm30_vm0, %v357_v6  ;;  %382 = vst.msk [vmem:[#allocation2 + $0x68] sm:$0xff] %vm30_vm0, %v365_v7  ;;  %v356_v34 = vadd.f32 %v293_v17, %v179_v61  ;;  %v364_v35 = vadd.f32 %v333_v18, %v187_v63  ;;  %v484_v61 = vpop.permute.xlu0 %483  ;;  %v189_v15 = vld [vmem:[#allocation2 + $0x70] sm:$0xff] }
 0x16e   :  { %v520_v33 = vmul.f32 %v479_v25, %v424_v16  ;;  %v415_v51 = vld [vmem:[#allocation2] sm:$0xff]  ;;  %v737_v53 = vpop.f32.mrf.mxu0  ;;  %v749_v37 = vpop.f32.mrf.mxu1  ;;  %v1245_v25 = vmul.f32 %v1085_v62, %v597_v2  ;;  %1401 = vst [vmem:[#allocation3_spill] sm:$0xff] %v1254_v60  ;;  %v1262_v60 = vmul.f32 %v1072_v55, %v550_v50 }
 0x16f   :  { %v423_v52 = vld [vmem:[#allocation2 + $0x40] sm:$0xff]  ;;  %v511_v63 = vmul.f32 %v1051_v38, %v415_v51  ;;  %373 = vst.msk [vmem:[#allocation2 + $0x20] sm:$0xff] %vm30_vm0, %v356_v34  ;;  %381 = vst.msk [vmem:[#allocation2 + $0x60] sm:$0xff] %vm30_vm0, %v364_v35  ;;  %v529_v2 = vmul.f32 %v1087_v3, %v512_v32  ;;  %v359_v17 = vadd.f32 %v737_v53, %v182_v21 }
 0x170   :  { %v519_v6 = vmul.f32 %v474_v49, %v423_v52  ;;  %v537_v7 = vmul.f32 %v1087_v3, %v520_v33  ;;  %v418_v16 = vld [vmem:[#allocation2 + $0x18] sm:$0xff]  ;;  %v367_v18 = vadd.f32 %v749_v37, %v190_v36  ;;  %v303_v14 = vpop.f32.mrf.mxu0  ;;  %v343_v38 = vpop.f32.mrf.mxu1  ;;  %v1265_v49 = vmul.f32 %v1072_v55, %v558_v46 }
 0x171   :  { %v426_v13 = vld [vmem:[#allocation2 + $0x58] sm:$0xff]  ;;  %v514_v34 = vmul.f32 %v1053_v39, %v418_v16  ;;  %v528_v32 = vmul.f32 %v1087_v3, %v511_v63  ;;  %v578_v21 = vadd.f32 %v1107_v11, %v529_v2  ;;  %376 = vst.msk [vmem:[#allocation2 + $0x38] sm:$0xff] %vm30_vm0, %v359_v17  ;;  %v358_v50 = vadd.f32 %v303_v14, %v181_v10  ;;  %v499_v46 = vpop.permute.xlu1 %498 }
 0x172   :  { %v522_v35 = vmul.f32 %v489_v31, %v426_v13  ;;  %v536_v33 = vmul.f32 %v1087_v3, %v519_v6  ;;  %v417_v51 = vld [vmem:[#allocation2 + $0x10] sm:$0xff]  ;;  %v586_v36 = vadd.f32 %v1110_v12, %v537_v7  ;;  %384 = vst.msk [vmem:[#allocation2 + $0x78] sm:$0xff] %vm30_vm0, %v367_v18  ;;  %v366_v55 = vadd.f32 %v343_v38, %v189_v15 }
 0x173   :  { %v425_v52 = vld [vmem:[#allocation2 + $0x50] sm:$0xff]  ;;  %v513_v39 = vmul.f32 %v1055_v40, %v417_v51  ;;  %v531_v53 = vmul.f32 %v1087_v3, %v514_v34  ;;  %v577_v11 = vadd.f32 %v1119_v19, %v528_v32  ;;  %v627_v2 = vadd.f32 %v1131_v23, %v578_v21  ;;  %375 = vst.msk [vmem:[#allocation2 + $0x30] sm:$0xff] %vm30_vm0, %v358_v50  ;;  %v494_v40 = vpop.permute.xlu0 %493 }
 0x174   :  { %v521_v31 = vmul.f32 %v484_v61, %v425_v52  ;;  %v539_v37 = vmul.f32 %v1087_v3, %v522_v35  ;;  %v420_v63 = vld [vmem:[#allocation2 + $0x28] sm:$0xff]  ;;  %v585_v12 = vadd.f32 %v1122_v20, %v536_v33  ;;  %v635_v7 = vadd.f32 %v1134_v24, %v586_v36  ;;  %383 = vst.msk [vmem:[#allocation2 + $0x70] sm:$0xff] %vm30_vm0, %v366_v55 }
 0x175   :  { %v428_v6 = vld [vmem:[#allocation2 + $0x68] sm:$0xff]  ;;  %v516_v61 = vmul.f32 %v1057_v41, %v420_v63  ;;  %v530_v15 = vmul.f32 %v1087_v3, %v513_v39  ;;  %v580_v20 = vadd.f32 %v1142_v29, %v531_v53  ;;  %v626_v24 = vadd.f32 %v1169_v47, %v577_v11  ;;  %643 = vst.msk [vmem:[%s1400_s7 + $0x8] sm:$0xff] %vm30_vm0, %v627_v2  ;;  %v1402_v63 = vld [vmem:[#allocation3_spill] sm:$0xff] }
 0x176   :  { %v524_v10 = vmul.f32 %v499_v46, %v428_v6  ;;  %v538_v16 = vmul.f32 %v1087_v3, %v521_v31  ;;  %v419_v13 = vld [vmem:[#allocation2 + $0x20] sm:$0xff]  ;;  %v588_v23 = vadd.f32 %v1145_v30, %v539_v37  ;;  %v634_v17 = vadd.f32 %v1172_v48, %v585_v12  ;;  %651 = vst.msk [vmem:[%s1400_s7 + $0x48] sm:$0xff] %vm30_vm0, %v635_v7 }
 0x177   :  { %v427_v19 = vld [vmem:[#allocation2 + $0x60] sm:$0xff]  ;;  %v515_v41 = vmul.f32 %v1059_v42, %v419_v13  ;;  %v533_v29 = vmul.f32 %v1087_v3, %v516_v61  ;;  %v579_v47 = vadd.f32 %v1160_v43, %v530_v15  ;;  %v629_v14 = vadd.f32 %v1186_v57, %v580_v20  ;;  %642 = vst.msk [vmem:[%s1400_s7] sm:$0xff] %vm30_vm0, %v626_v24  ;;  %v509_v42 = vpop.permute.xlu1 %508 }
 0x178   :  { %v523_v18 = vmul.f32 %v494_v40, %v427_v19  ;;  %v541_v30 = vmul.f32 %v1087_v3, %v524_v10  ;;  %v587_v48 = vadd.f32 %v1163_v44, %v538_v16  ;;  %v637_v38 = vadd.f32 %v1189_v58, %v588_v23  ;;  %650 = vst.msk [vmem:[%s1400_s7 + $0x40] sm:$0xff] %vm30_vm0, %v634_v17  ;;  %v422_v58 = vld [vmem:[#allocation2 + $0x38] sm:$0xff] }
 0x179   :  { %v532_v34 = vmul.f32 %v1087_v3, %v515_v41  ;;  %v582_v44 = vadd.f32 %v1192_v0, %v533_v29  ;;  %v430_v35 = vld [vmem:[#allocation2 + $0x78] sm:$0xff]  ;;  %v518_v32 = vmul.f32 %v1061_v45, %v422_v58  ;;  %v628_v51 = vadd.f32 %v1201_v4, %v579_v47  ;;  %645 = vst.msk [vmem:[%s1400_s7 + $0x18] sm:$0xff] %vm30_vm0, %v629_v14  ;;  %v599_v0 = vld [vmem:[%s1399_s6 + $0x30] sm:$0xff] }
 0x17a   :  { %v540_v43 = vmul.f32 %v1087_v3, %v523_v18  ;;  %v590_v57 = vadd.f32 %v1195_v1, %v541_v30  ;;  %v526_v33 = vmul.f32 %v509_v42, %v430_v35  ;;  %v636_v52 = vadd.f32 %v1204_v5, %v587_v48  ;;  %653 = vst.msk [vmem:[%s1400_s7 + $0x58] sm:$0xff] %vm30_vm0, %v637_v38  ;;  %v607_v45 = vld [vmem:[%s1399_s6 + $0x70] sm:$0xff]  ;;  %v504_v1 = vpop.permute.xlu0 %503 }
 0x17b   :  { %v581_v4 = vadd.f32 %v1209_v8, %v532_v34  ;;  %v631_v21 = vadd.f32 %v1230_v27, %v582_v44  ;;  %v421_v50 = vld [vmem:[#allocation2 + $0x30] sm:$0xff]  ;;  %v535_v46 = vmul.f32 %v1087_v3, %v518_v32  ;;  %644 = vst.msk [vmem:[%s1400_s7 + $0x10] sm:$0xff] %vm30_vm0, %v628_v51  ;;  %v616_v31 = vmul.f32 %v1085_v62, %v599_v0 }
 0x17c   :  { %v589_v5 = vadd.f32 %v1212_v9, %v540_v43  ;;  %v639_v36 = vadd.f32 %v1233_v28, %v590_v57  ;;  %v429_v55 = vld [vmem:[#allocation2 + $0x70] sm:$0xff]  ;;  %v543_v39 = vmul.f32 %v1087_v3, %v526_v33  ;;  %652 = vst.msk [vmem:[%s1400_s7 + $0x50] sm:$0xff] %vm30_vm0, %v636_v52  ;;  %v517_v8 = vmul.f32 %v1074_v56, %v421_v50 }
 0x17d   :  { %v525_v9 = vmul.f32 %v504_v1, %v429_v55  ;;  %v630_v27 = vadd.f32 %v1245_v25, %v581_v4  ;;  %647 = vst.msk [vmem:[%s1400_s7 + $0x28] sm:$0xff] %vm30_vm0, %v631_v21  ;;  %v624_v53 = vmul.f32 %v1085_v62, %v607_v45  ;;  %v584_v56 = vadd.f32 %v1224_v22, %v535_v46 }
 0x17e   :  { %v638_v28 = vadd.f32 %v1251_v59, %v589_v5  ;;  %655 = vst.msk [vmem:[%s1400_s7 + $0x68] sm:$0xff] %vm30_vm0, %v639_v36  ;;  %v592_v25 = vadd.f32 %v1227_v26, %v543_v39  ;;  %v534_v59 = vmul.f32 %v1087_v3, %v517_v8 }
 0x17f   :  { %v542_v37 = vmul.f32 %v1087_v3, %v525_v9  ;;  %646 = vst.msk [vmem:[%s1400_s7 + $0x20] sm:$0xff] %vm30_vm0, %v630_v27  ;;  %v633_v62 = vadd.f32 %v1248_v54, %v584_v56 }
 0x180   :  { %654 = vst.msk [vmem:[%s1400_s7 + $0x60] sm:$0xff] %vm30_vm0, %v638_v28  ;;  %v641_v22 = vadd.f32 %v1402_v63, %v592_v25  ;;  %v583_v26 = vadd.f32 %v1262_v60, %v534_v59 }
 0x181   :  { %v591_v6 = vadd.f32 %v1265_v49, %v542_v37  ;;  %649 = vst.msk [vmem:[%s1400_s7 + $0x38] sm:$0xff] %vm30_vm0, %v633_v62 }
 0x182   :  { %657 = vst.msk [vmem:[%s1400_s7 + $0x78] sm:$0xff] %vm30_vm0, %v641_v22  ;;  %v632_v3 = vadd.f32 %v616_v31, %v583_v26 }
 0x183   :  { %v640_v11 = vadd.f32 %v624_v53, %v591_v6 }
 0x184   :  { %648 = vst.msk [vmem:[%s1400_s7 + $0x30] sm:$0xff] %vm30_vm0, %v632_v3 }
 0x185   :  { %656 = vst.msk [vmem:[%s1400_s7 + $0x70] sm:$0xff] %vm30_vm0, %v640_v11 }

</bundles_post_ra>
